<compile_context>
chip_gen: v7x
topology: tpu7x:2x2x1
jax: 0.10.0
libtpu: 0.0.40
codegen_flags: <defaults>
</compile_context>

<pallas_src>
import functools

import jax
import jax.numpy as jnp
from jax import lax
from jax.experimental import pallas as pl
from jax.experimental.pallas import tpu as pltpu

EPS = 1e-5
LANE = 128


def _round_up(x, m):
    return (x + m - 1) // m * m


def _vmem_budget_bytes():
    """Generation-aware VMEM budget (v7x ~48 MiB, v5e/v6e ~96 MiB)."""
    cap = 64 << 20
    try:
        cap = int(getattr(pltpu.get_tpu_info(), "vmem_capacity_bytes", cap))
    except Exception:
        pass                                   # no TPU info -> conservative default
    return int(min(cap * 3 // 4, 96 << 20))


def _pick_batch_block(N, L, Co_p, budget):
    """Largest batch block whose peak-pass VMEM footprint fits ~half the budget,
    while keeping N % NB == 0 and the grid G = N // NB >= 2 (megacore)."""
    per_row = 40 * L * Co_p                    # approx peak-pass bytes per batch row
    cap = max(1, budget // (2 * per_row))
    valid = [d for d in range(1, N + 1)
             if N % d == 0 and d <= cap and (N // d >= 2 or N == 1)]
    if not valid:
        return 1
    even = [d for d in valid if (N // d) % 2 == 0]
    return max(even) if even else max(valid)


def _compiler_params(budget):
    return pltpu.CompilerParams(dimension_semantics=("parallel",),
                                vmem_limit_bytes=int(budget))


# ---------- kernel A: conv1 (k=3, pad=1) + BN1 partial stats -------------------
def _conv1_stats_kernel(x_ref, w_ref, c1_ref, st_ref):
    # x_ref : (NB, L, Ci)  input block, native channel count, f32
    # w_ref : (3, Ci, Co)  conv1 taps (compute dtype, e.g. bf16)
    # c1_ref: (NB, L, Co)  raw conv1 output (compute dtype)
    # st_ref: (1, 2, Co)   per-block [sum, sumsq] BN1 partials, f32
    NB, L, Ci = x_ref.shape
    Co = w_ref.shape[2]
    x = x_ref[...]                                           # f32
    z = jnp.zeros((NB, 1, Ci), x.dtype)
    taps = (jnp.concatenate([z, x[:, :L - 1, :]], axis=1),   # x[t-1] (0 at t=0)
            x,                                               # x[t]
            jnp.concatenate([x[:, 1:, :], z], axis=1))       # x[t+1] (0 at t=L-1)
    acc = jnp.zeros((NB * L, Co), jnp.float32)
    for k in range(3):
        acc = acc + jnp.dot(taps[k].astype(w_ref.dtype).reshape(NB * L, Ci),
                            w_ref[k], preferred_element_type=jnp.float32)
    c1_ref[...] = acc.reshape(NB, L, Co).astype(c1_ref.dtype)
    s = jnp.sum(acc, axis=0, keepdims=True)
    ss = jnp.sum(acc * acc, axis=0, keepdims=True)
    st_ref[...] = jnp.concatenate([s, ss], axis=0)[None]     # one store per step


# ---------- shared body: BN1+ReLU -> dilated conv2 (k=3, dil=2, pad=2) ---------
def _dilated_conv2(c1_raw, s1, b1, w_ref):
    """Returns the raw conv2 accumulator, f32, shape (NB*L, Co)."""
    NB, L, C = c1_raw.shape
    Co = w_ref.shape[2]
    h = jnp.maximum(c1_raw.astype(jnp.float32) * s1 + b1, 0.0)   # BN1 + ReLU, f32
    z = jnp.zeros((NB, 2, C), h.dtype)
    taps = (jnp.concatenate([z, h[:, :L - 2, :]], axis=1),       # h[t-2]
            h,                                                   # h[t]
            jnp.concatenate([h[:, 2:, :], z], axis=1))           # h[t+2]
    acc = jnp.zeros((NB * L, Co), jnp.float32)
    for k in range(3):
        acc = acc + jnp.dot(taps[k].astype(w_ref.dtype).reshape(NB * L, C),
                            w_ref[k], preferred_element_type=jnp.float32)
    return acc


# ---------- kernel B: BN2 partial stats only (c2 never hits HBM) ---------------
def _bn1_conv2_stats_kernel(c1_ref, s1_ref, b1_ref, w_ref, st_ref):
    acc = _dilated_conv2(c1_ref[...], s1_ref[...], b1_ref[...], w_ref)
    s = jnp.sum(acc, axis=0, keepdims=True)
    ss = jnp.sum(acc * acc, axis=0, keepdims=True)
    st_ref[...] = jnp.concatenate([s, ss], axis=0)[None]


# ---------- kernel C: recompute conv2, BN2+ReLU, max-pool, write output --------
def _bn_pool_out_kernel(c1_ref, s1_ref, b1_ref, w_ref, s2_ref, b2_ref,
                        o_ref, y_ref, *, pool_size):
    NB, L, _ = c1_ref.shape
    L_out = o_ref.shape[1]
    Co = o_ref.shape[2]
    acc = _dilated_conv2(c1_ref[...], s1_ref[...], b1_ref[...], w_ref)
    # BN2 + ReLU into a VMEM scratch, then strided reads for the pool windows.
    y_ref[...] = jnp.maximum(acc.reshape(NB, L, Co) * s2_ref[...] + b2_ref[...], 0.0)
    best = y_ref[:, pl.ds(0, L_out, pool_size), :]
    for k in range(1, pool_size):
        best = jnp.maximum(best, y_ref[:, pl.ds(k, L_out, pool_size), :])
    o_ref[...] = best.astype(o_ref.dtype)


def conv_block_1d(x_ncl, w1, w2, gamma1, beta1, gamma2, beta2,
                  pool_size=2, batch_block=None, compute_dtype=jnp.bfloat16):
    """x_ncl: (N, Cin, L) float, PyTorch NCL layout. Returns (N, Co, L // pool_size)."""
    N, Cin, L = x_ncl.shape
    Co = w1.shape[0]
    assert w1.shape == (Co, Cin, 3) and w2.shape == (Co, Co, 3)
    assert L >= 4 and 1 <= pool_size <= L
    L_out = L // pool_size                 # PyTorch MaxPool1d truncates the tail
    f32 = jnp.float32
    Co_p = _round_up(Co, LANE)
    cnt = float(N * L)

    budget = _vmem_budget_bytes()
    NB = _pick_batch_block(N, L, Co_p, budget) if batch_block is None else batch_block
    assert N % NB == 0
    G = N // NB
    cp = _compiler_params(budget)

    # ---- glue: NCL -> NLC; only weights / BN params are channel-padded ----------
    x_nlc = jnp.transpose(x_ncl, (0, 2, 1)).astype(f32)              # (N, L, Cin)
    w1_t = jnp.pad(jnp.transpose(w1, (2, 1, 0)),
                   ((0, 0), (0, 0), (0, Co_p - Co))).astype(compute_dtype)
    w2_t = jnp.pad(jnp.transpose(w2, (2, 1, 0)),
                   ((0, 0), (0, Co_p - Co), (0, Co_p - Co))).astype(compute_dtype)
    g1 = jnp.pad(gamma1.astype(f32), (0, Co_p - Co))
    b1 = jnp.pad(beta1.astype(f32), (0, Co_p - Co))
    g2 = jnp.pad(gamma2.astype(f32), (0, Co_p - Co))
    b2 = jnp.pad(beta2.astype(f32), (0, Co_p - Co))

    def act_spec(length, chans):
        return pl.BlockSpec((NB, length, chans), lambda i: (i, 0, 0))

    vec_spec = pl.BlockSpec((1, Co_p), lambda i: (0, 0))
    st_spec = pl.BlockSpec((1, 2, Co_p), lambda i: (i, 0, 0))
    w1_spec = pl.BlockSpec((3, Cin, Co_p), lambda i: (0, 0, 0))
    w2_spec = pl.BlockSpec((3, Co_p, Co_p), lambda i: (0, 0, 0))

    # ---- pass 1: conv1 + BN1 partial stats ---------------------------------------
    c1, st1 = pl.pallas_call(
        _conv1_stats_kernel,
        grid=(G,),
        in_specs=[act_spec(L, Cin), w1_spec],
        out_specs=(act_spec(L, Co_p), st_spec),
        out_shape=(jax.ShapeDtypeStruct((N, L, Co_p), compute_dtype),
                   jax.ShapeDtypeStruct((G, 2, Co_p), f32)),
        compiler_params=cp,
    )(x_nlc, w1_t)

    mean1 = st1[:, 0, :].sum(0) / cnt
    var1 = jnp.maximum(st1[:, 1, :].sum(0) / cnt - mean1 * mean1, 0.0)
    scale1 = g1 * lax.rsqrt(var1 + EPS)
    bias1 = b1 - mean1 * scale1

    # ---- pass 2: BN1+ReLU -> dilated conv2 -> BN2 partial stats (no c2 writeback) -
    st2 = pl.pallas_call(
        _bn1_conv2_stats_kernel,
        grid=(G,),
        in_specs=[act_spec(L, Co_p), vec_spec, vec_spec, w2_spec],
        out_specs=st_spec,
        out_shape=jax.ShapeDtypeStruct((G, 2, Co_p), f32),
        compiler_params=cp,
    )(c1, scale1[None], bias1[None], w2_t)

    mean2 = st2[:, 0, :].sum(0) / cnt
    var2 = jnp.maximum(st2[:, 1, :].sum(0) / cnt - mean2 * mean2, 0.0)
    scale2 = g2 * lax.rsqrt(var2 + EPS)
    bias2 = b2 - mean2 * scale2

    # ---- pass 3: recompute conv2, BN2+ReLU, max-pool, write lane-dense output ----
    out = pl.pallas_call(
        functools.partial(_bn_pool_out_kernel, pool_size=pool_size),
        grid=(G,),
        in_specs=[act_spec(L, Co_p), vec_spec, vec_spec, w2_spec, vec_spec, vec_spec],
        out_specs=pl.BlockSpec((NB, L_out, Co_p), lambda i: (i, 0, 0)),
        out_shape=jax.ShapeDtypeStruct((N, L_out, Co_p), f32),
        scratch_shapes=[pltpu.VMEM((NB, L, Co_p), f32)],
        compiler_params=cp,
    )(c1, scale1[None], bias1[None], w2_t, scale2[None], bias2[None])

    return jnp.transpose(out[:, :, :Co], (0, 2, 1))      # back to (N, Co, L_out)


def reference(x, w1, w2, g1, b1, g2, b2, pool_size=2):
    """Pure-JAX reference mirroring the PyTorch forward (training-mode BN)."""
    dn = ('NCH', 'OIH', 'NCH')

    def bn_relu(y, g, b):
        mu = y.mean(axis=(0, 2), keepdims=True)
        var = ((y - mu) ** 2).mean(axis=(0, 2), keepdims=True)
        y = (y - mu) / jnp.sqrt(var + EPS) * g[None, :, None] + b[None, :, None]
        return jnp.maximum(y, 0.0)

    y = lax.conv_general_dilated(x, w1, window_strides=(1,), padding=((1, 1),),
                                 dimension_numbers=dn)
    y = bn_relu(y, g1, b1)
    y = lax.conv_general_dilated(y, w2, window_strides=(1,), padding=((2, 2),),
                                 rhs_dilation=(2,), dimension_numbers=dn)
    y = bn_relu(y, g2, b2)
    N, C, L = y.shape
    L_out = L // pool_size
    y = y[:, :, :L_out * pool_size].reshape(N, C, L_out, pool_size)
    return y.max(axis=-1)


if __name__ == "__main__":
    key = jax.random.PRNGKey(0)
    kx, k1, k2, k3, k4, k5, k6 = jax.random.split(key, 7)

    N, Cin, Co, L = 2, 4, 8, 16
    x = jax.random.normal(kx, (N, Cin, L), jnp.float32)
    w1 = jax.random.normal(k1, (Co, Cin, 3), jnp.float32) * 0.3
    w2 = jax.random.normal(k2, (Co, Co, 3), jnp.float32) * 0.3
    gamma1 = 1.0 + 0.1 * jax.random.normal(k3, (Co,), jnp.float32)
    beta1 = 0.1 * jax.random.normal(k4, (Co,), jnp.float32)
    gamma2 = 1.0 + 0.1 * jax.random.normal(k5, (Co,), jnp.float32)
    beta2 = 0.1 * jax.random.normal(k6, (Co,), jnp.float32)

    ref = reference(x, w1, w2, gamma1, beta1, gamma2, beta2, pool_size=2)

    # f32 compute path: tight numerical check against the pure-JAX reference.
    out_f32 = conv_block_1d(x, w1, w2, gamma1, beta1, gamma2, beta2,
                            pool_size=2, compute_dtype=jnp.float32)
    out_f32 = jax.block_until_ready(out_f32)
    assert out_f32.shape == ref.shape == (N, Co, L // 2), (out_f32.shape, ref.shape)
    err32 = float(jnp.max(jnp.abs(out_f32 - ref)))
    assert jnp.allclose(out_f32, ref, atol=2e-4, rtol=2e-4), f"f32 max err {err32}"

    # bf16 matmul path (performance default): looser check (bf16 operands, f32 accum).
    out_bf16 = conv_block_1d(x, w1, w2, gamma1, beta1, gamma2, beta2, pool_size=2)
    out_bf16 = jax.block_until_ready(out_bf16)
    assert out_bf16.shape == ref.shape
    err16 = float(jnp.max(jnp.abs(out_bf16 - ref)))
    assert jnp.allclose(out_bf16, ref, atol=8e-2, rtol=8e-2), f"bf16 max err {err16}"

    print("KERNEL_OK")
</pallas_src>

<mosaic_0001>
module attributes {stable_mosaic.version = 11 : i64} {
  func.func @_conv1_stats_kernel(%arg0: i32, %arg1: memref<1x16x4xf32, #tpu.memory_space<vmem>>, %arg2: memref<3x4x128xf32, #tpu.memory_space<vmem>>, %arg3: memref<1x16x128xf32, #tpu.memory_space<vmem>>, %arg4: memref<1x2x128xf32, #tpu.memory_space<vmem>>) attributes {dimension_semantics = [#tpu.dimension_semantics<parallel>], iteration_bounds = array<i64: 2>, scalar_prefetch = 0 : i64, scratch_operands = 0 : i64, tpu.core_type = #tpu.core_type<tc>, window_params = [{transform_indices = @transform_0, window_bounds = array<i64: 1, 16, 4>}, {pipeline_mode = #tpu.pipeline_mode<synchronous>, transform_indices = @transform_1, window_bounds = array<i64: 3, 4, 128>}, {transform_indices = @transform_2, window_bounds = array<i64: 1, 16, 128>}, {transform_indices = @transform_3, window_bounds = array<i64: 1, 2, 128>}]} {
    %c0 = arith.constant 0 : index
    %c0_0 = arith.constant 0 : index
    %c0_1 = arith.constant 0 : index
    %0 = vector.load %arg1[%c0, %c0_0, %c0_1] : memref<1x16x4xf32, #tpu.memory_space<vmem>>, vector<1x16x4xf32>
    %cst = arith.constant 0.000000e+00 : f32
    %1 = vector.broadcast %cst : f32 to vector<1x1x4xf32>
    %2 = vector.extract_strided_slice %0 {offsets = [0, 0, 0], sizes = [1, 15, 4], strides = [1, 1, 1]} : vector<1x16x4xf32> to vector<1x15x4xf32>
    %3 = tpu.concatenate %1, %2 in 1 : vector<1x1x4xf32>, vector<1x15x4xf32> -> vector<1x16x4xf32>
    %4 = vector.extract_strided_slice %0 {offsets = [0, 1, 0], sizes = [1, 15, 4], strides = [1, 1, 1]} : vector<1x16x4xf32> to vector<1x15x4xf32>
    %5 = tpu.concatenate %4, %1 in 1 : vector<1x15x4xf32>, vector<1x1x4xf32> -> vector<1x16x4xf32>
    %cst_2 = arith.constant 0.000000e+00 : f32
    %6 = vector.broadcast %cst_2 : f32 to vector<16x128xf32>
    %7 = vector.shape_cast %3 : vector<1x16x4xf32> to vector<16x4xf32>
    %c0_3 = arith.constant 0 : index
    %c0_4 = arith.constant 0 : index
    %c0_5 = arith.constant 0 : index
    %8 = vector.load %arg2[%c0_3, %c0_4, %c0_5] : memref<3x4x128xf32, #tpu.memory_space<vmem>>, vector<1x4x128xf32>
    %9 = vector.shape_cast %8 : vector<1x4x128xf32> to vector<4x128xf32>
    %cst_6 = arith.constant dense<0.000000e+00> : vector<16x128xf32>
    %10 = tpu.matmul %7, %9, %cst_6 {dimension_numbers = #tpu.dot_dimension_numbers<[1], [0], [0], [1], [0, 0, 1, 1], [], []>} : vector<16x4xf32>, vector<4x128xf32>, vector<16x128xf32> -> vector<16x128xf32>
    %11 = arith.addf %6, %10 : vector<16x128xf32>
    %12 = vector.shape_cast %0 : vector<1x16x4xf32> to vector<16x4xf32>
    %c1 = arith.constant 1 : index
    %c0_7 = arith.constant 0 : index
    %c0_8 = arith.constant 0 : index
    %13 = vector.load %arg2[%c1, %c0_7, %c0_8] : memref<3x4x128xf32, #tpu.memory_space<vmem>>, vector<1x4x128xf32>
    %14 = vector.shape_cast %13 : vector<1x4x128xf32> to vector<4x128xf32>
    %cst_9 = arith.constant dense<0.000000e+00> : vector<16x128xf32>
    %15 = tpu.matmul %12, %14, %cst_9 {dimension_numbers = #tpu.dot_dimension_numbers<[1], [0], [0], [1], [0, 0, 1, 1], [], []>} : vector<16x4xf32>, vector<4x128xf32>, vector<16x128xf32> -> vector<16x128xf32>
    %16 = arith.addf %11, %15 : vector<16x128xf32>
    %17 = vector.shape_cast %5 : vector<1x16x4xf32> to vector<16x4xf32>
    %c2 = arith.constant 2 : index
    %c0_10 = arith.constant 0 : index
    %c0_11 = arith.constant 0 : index
    %18 = vector.load %arg2[%c2, %c0_10, %c0_11] : memref<3x4x128xf32, #tpu.memory_space<vmem>>, vector<1x4x128xf32>
    %19 = vector.shape_cast %18 : vector<1x4x128xf32> to vector<4x128xf32>
    %cst_12 = arith.constant dense<0.000000e+00> : vector<16x128xf32>
    %20 = tpu.matmul %17, %19, %cst_12 {dimension_numbers = #tpu.dot_dimension_numbers<[1], [0], [0], [1], [0, 0, 1, 1], [], []>} : vector<16x4xf32>, vector<4x128xf32>, vector<16x128xf32> -> vector<16x128xf32>
    %21 = arith.addf %16, %20 : vector<16x128xf32>
    %22 = vector.shape_cast %21 : vector<16x128xf32> to vector<1x16x128xf32>
    %c0_13 = arith.constant 0 : index
    %c0_14 = arith.constant 0 : index
    %c0_15 = arith.constant 0 : index
    %23 = vector.load %arg3[%c0_13, %c0_14, %c0_15] : memref<1x16x128xf32, #tpu.memory_space<vmem>>, vector<1x16x128xf32>
    tpu.vector_store %arg3[%c0_13, %c0_14, %c0_15], %22 {strides = array<i32>} : memref<1x16x128xf32, #tpu.memory_space<vmem>>, vector<1x16x128xf32>,
    %cst_16 = arith.constant dense<0.000000e+00> : vector<128xf32>
    %24 = vector.multi_reduction <add>, %21, %cst_16 [0] : vector<16x128xf32> to vector<128xf32>
    %25 = vector.shape_cast %24 : vector<128xf32> to vector<1x128xf32>
    %26 = arith.mulf %21, %21 : vector<16x128xf32>
    %cst_17 = arith.constant dense<0.000000e+00> : vector<128xf32>
    %27 = vector.multi_reduction <add>, %26, %cst_17 [0] : vector<16x128xf32> to vector<128xf32>
    %28 = vector.shape_cast %27 : vector<128xf32> to vector<1x128xf32>
    %29 = tpu.concatenate %25, %28 in 0 : vector<1x128xf32>, vector<1x128xf32> -> vector<2x128xf32>
    %30 = vector.shape_cast %29 : vector<2x128xf32> to vector<1x2x128xf32>
    %c0_18 = arith.constant 0 : index
    %c0_19 = arith.constant 0 : index
    %c0_20 = arith.constant 0 : index
    %31 = vector.load %arg4[%c0_18, %c0_19, %c0_20] : memref<1x2x128xf32, #tpu.memory_space<vmem>>, vector<1x2x128xf32>
    tpu.vector_store %arg4[%c0_18, %c0_19, %c0_20], %30 {strides = array<i32>} : memref<1x2x128xf32, #tpu.memory_space<vmem>>, vector<1x2x128xf32>,
    return
  }
  func.func @transform_0(%arg0: i32) -> (i32, i32, i32) {
    %c0_i32 = arith.constant 0 : i32
    %c0_i32_0 = arith.constant 0 : i32
    %c0_i32_1 = arith.constant 0 : i32
    return %arg0, %c0_i32, %c0_i32_0 : i32, i32, i32
  }
  func.func @transform_1(%arg0: i32) -> (i32, i32, i32) {
    %c0_i32 = arith.constant 0 : i32
    %c0_i32_0 = arith.constant 0 : i32
    %c0_i32_1 = arith.constant 0 : i32
    %c0_i32_2 = arith.constant 0 : i32
    return %c0_i32, %c0_i32_0, %c0_i32_1 : i32, i32, i32
  }
  func.func @transform_2(%arg0: i32) -> (i32, i32, i32) {
    %c0_i32 = arith.constant 0 : i32
    %c0_i32_0 = arith.constant 0 : i32
    %c0_i32_1 = arith.constant 0 : i32
    return %arg0, %c0_i32, %c0_i32_0 : i32, i32, i32
  }
  func.func @transform_3(%arg0: i32) -> (i32, i32, i32) {
    %c0_i32 = arith.constant 0 : i32
    %c0_i32_0 = arith.constant 0 : i32
    %c0_i32_1 = arith.constant 0 : i32
    return %arg0, %c0_i32, %c0_i32_0 : i32, i32, i32
  }
}

</mosaic_0001>

<bundles_post_ra>
// kernel: tpu_custom_call.1
= control target key start
LH: loop header
LB: loop body
LE: loop exit
PB: predicated region body
PF: predicated region fallthrough
CT: control target
= control target key end

     0   :  { %9 = vsyncpa [#allocation3], 0  ;;  %s982_s0 = inlined_call_operand.vmem [shape: f32[2,16,4], index: 0, kind: input, shape index: {}]   ;;  %s983_s1 = inlined_call_operand.vmem [shape: f32[3,4,128], index: 1, kind: input, shape index: {}]   ;;  %s984_s2 = inlined_call_operand.hbm [shape: f32[2,16,128], index: 2, kind: output, shape index: {0}]   ;;  %s985_s3 = inlined_call_operand.hbm [shape: f32[2,2,128], index: 3, kind: output, shape index: {1}]  }
   0x1   :  { %11 = vsyncpa [#allocation3 + $0x1], 0 }
   0x2   :  { %12 = vsyncpa [#allocation5], 0 }
   0x3   :  { %14 = vsyncpa [#allocation5 + $0x1], 0  ;;  %s821_s12 = smov 0   ;;  %s823_s13 = smov 0  }
   0x4   :  { %s825_s14 = smov 0   ;;  %s827_s15 = smov 0  }
   0x5 LB: > { %s842_s16 = sadd.s32 4294967295, %s795_s15   ;;  %s599_s17 = sadd.s32 4294967294, %s795_s15   ;;  %s795_s15 = sphi %s827_s15, %s991_s15   ;;  %s791_s14 = sphi %s825_s14, %s990_s14   ;;  %s787_s13 = sphi %s823_s13, %s989_s13   ;;  %s783_s12 = sphi %s821_s12, %s988_s12  }
   0x6   : > { %s846_s18 = sadd.s32 1, %s795_s15   ;;  %s74_s19 = sadd.s32 1, %s791_s14 }
   0x7   : > { %s71_s20 = ssub.s32 %s795_s15, %s846_s18  ;;  %p84_p0 = scmp.ne.s32.totalorder %s791_s14, %s787_s13 }
   0x8   : > { %p72_p1 = scmp.eq.s32.totalorder %s71_s20, 0  ;;  %p85_p2 = scmp.eq.s32.totalorder %s842_s16, 1 }
   0x9   : > { %p90_p3 = scmp.ne.s32.totalorder %s787_s13, %s783_s12  ;;  %p91_p4 = scmp.eq.s32.totalorder %s599_s17, 1 }
   0xa   : > { %s857_s21 = scalar_select %p72_p1, %s791_s14, %s74_s19  }
   0xb   : > { %p859_p5 = por %p85_p2, %p84_p0  ;;  %p863_p6 = por %p91_p4, %p90_p3 }
   0xc   : > { %p602_p7 = scmp.ge.s32.totalorder %s795_s15, 1  ;;  %p146_p8 = scmp.lt.s32.totalorder %s795_s15, 3 }
   0xe   : > { %p147_p9 = pnand %p602_p7, %p146_p8 }
   0xf   : > { %v196_v0 = vld [vmem:[%s983_s1] sm:$0xf] (!%p147_p9)  ;;  %vm204_vm0 = vcmask (!%p147_p9), 1043456   ;;  %p175_p10 = scmp.lt.s32.totalorder (!%p147_p9), %s842_s16, 1  ;;  %v614_v1 = vld [vmem:[%s983_s1 + $0x8] sm:$0xf] (!%p147_p9) }
  0x10   : > { %150 = sbr.rel (%p147_p9) target bundleno = 297 (0x129), region = 28  ;;  %641 = vmatprep.subr.msk.mxu0 (!%p147_p9), %vm204_vm0, %v196_v0  ;;  %v607_v2 = vld [vmem:[%s983_s1 + $0x4] sm:$0xf] (!%p147_p9)  ;;  %vm184_vm1 = vcmask (!%p147_p9), 1040384   ;;  %vm199_vm2 = vcmask (!%p147_p9), 31744   ;;  %vm190_vm3 = vcmask (!%p147_p9), 1046528  }
  0x11   : > { %642 = vmatpush3.msk.msra.mxu0 (!%p147_p9), %vm204_vm0, %v196_v0  ;;  %636 = vmatprep.subr.msk.mxu1 (!%p147_p9), %vm204_vm0, %v607_v2  ;;  %s898_s8 = sand.u32 (!%p147_p9), 1, %s787_s13   ;;  %s626_s17 = sshll.u32 (!%p147_p9), %s842_s16, 8 }
  0x12   : > { %646 = vmatprep.subr.msk.mxu0 (!%p147_p9), %vm204_vm0, %v614_v1  ;;  %637 = vmatpush3.msk.msra.mxu1 (!%p147_p9), %vm204_vm0, %v607_v2  ;;  %s603_s9 = sshll.u32 (!%p147_p9), %s898_s8, 4  ;;  %s907_s24 = scalar_lea.hbm (!%p147_p9), %s984_s2, %s626_s17 }
  0x13   : > { %s167_s10 = scalar_lea.vmem (!%p147_p9), [#allocation2], %s603_s9  ;;  %s474_s25 = scalar_lea.sflag (!%p147_p9), [#allocation3], %s898_s8 }
  0x14   : > { %s492_s11 = sshll.u32 (!%p147_p9), %s167_s10, 4  ;;  %s797_s27 = smov (!%p147_p9), [#allocation2]   ;;  %s902_s11 = int_to_ptr.vmem [resolvable:$true] %s492_s11 }
  0x15   : > { %s701_s26 = scalar_lea.vmem (!%p147_p9), %s902_s11, 256  ;;  %s705_s28 = sshll.u32 (!%p147_p9), %s797_s27, 4  ;;  %s706_s28 = int_to_ptr.vmem [resolvable:$false] %s705_s28 }
  0x16   : > { %p702_p11 = scmp.ne.s32.totalorder (!%p147_p9), %s902_s11, %s701_s26  ;;  %s707_s29 = scalar_lea.vmem (!%p147_p9), %s706_s28, 512 }
  0x17   : > { %s176_s30 = scalar_select %p175_p10, %s842_s16, 1 }
  0x18   : > { %p703_p12 = pnand %p702_p11, %p859_p5  ;;  %p708_p0 = scmp.lt.s32.totalorder %s902_s11, %s706_s28 }
  0x19   : > { %s625_s4 = sshll.u32 %s176_s30, 4  ;;  %p709_p1 = scmp.lt.s32.totalorder %s707_s29, %s701_s26 }
  0x1a   : > { %s179_s7 = scalar_lea.vmem %s982_s0, %s625_s4  ;;  %p704_p13 = pneg %p703_p12 }
  0x1b   : > { %v180_v3 = vld [vmem:[%s179_s7] sm:$0xff]  ;;  %v181_v4 = vld [vmem:[%s179_s7 + $0x8] sm:$0xff]  ;;  %p710_p2 = por %p709_p1, %p708_p0 }
  0x1c   : > { %v185_v5 = vrot.slane %v180_v3, 7  ;;  %v191_v6 = vrot.slane %v180_v3, 1  ;;  %v186_v7 = vrot.slane %v181_v4, 7  ;;  %638 = vmatprep.mubr.msk.f32.mxu1 %vm199_vm2, %v180_v3  ;;  %v192_v8 = vrot.slane %v181_v4, 1 }
  0x1d   : > { %639 = vmatmul.mubr.msk.f32.vlgmr.msra.gmra.mrb[0].mxu1 %vm199_vm2, %v181_v4  ;;  %p711_p3 = pnand %p710_p2, %p704_p13 }
  0x1e   : > { %v189_v9 = vsel %vm184_vm1, 0.0, %v185_v5  ;;  %v187_v10 = vsel %vm184_vm1, %v185_v5, %v186_v7  ;;  %v193_v11 = vsel %vm190_vm3, %v191_v6, %v192_v8  ;;  %v195_v12 = vsel %vm190_vm3, %v192_v8, 0.0 }
  0x1f   : > { %643 = vmatprep.mubr.msk.f32.mxu0 %vm199_vm2, %v189_v9 }
  0x20   : > { %644 = vmatmul.mubr.msk.f32.vlgmr.msra.gmra.mrb[0].mxu0 %vm199_vm2, %v187_v10 }
  0x21   : > { %647 = vmatpush3.msk.msra.mxu0 %vm204_vm0, %v614_v1  ;;  %648 = vmatprep.mubr.msk.f32.mxu0 %vm199_vm2, %v193_v11 }
  0x28   : > { %649 = vmatmul.mubr.msk.f32.vlgmr.msra.gmra.mrb[0].mxu0 %vm199_vm2, %v195_v12 }
  0xf0   : > { %v640_v13 = vpop.f32.mrb[0].mxu1 }
  0xf1   : > { %v274_v14 = vpop.f32.mrb[1].mxu1 }
  0xfb   : > { %v650_v15 = vpop.f32.mrb[0].mxu0 }
  0xfc   : > { %v651_v16 = vadd.f32 %v650_v15, %v640_v13  ;;  %v442_v17 = vpop.f32.mrb[1].mxu0 }
  0xfd   : > { %v652_v18 = vadd.f32 %v442_v17, %v274_v14 }
  0xfe   : > { %454 = vst [vmem:[%s167_s10 + $0x8] sm:$0xff] %v651_v16  ;;  %v463_v19 = vmul.f32 %v651_v16, %v651_v16 }
  0xff   : > { %453 = vst [vmem:[%s167_s10] sm:$0xff] %v652_v18  ;;  %v455_v20 = vadd.f32 %v652_v18, %v651_v16  ;;  %v462_v21 = vmul.f32 %v652_v18, %v652_v18 }
 0x100   : > { %714 = shalt.err (!%p711_p3)
}
 0x101   : > { %s715_s30 = scalar_lea.hbm %s907_s24, 256  ;;  %s719_s6 = scalar_lea.hbm %s984_s2, 512 }
 0x102   : > { %p716_p4 = scmp.ne.s32.totalorder %s907_s24, %s715_s30  ;;  %p720_p9 = scmp.lt.u32.totalorder %s907_s24, %s984_s2 }
 0x103   : > { %p721_p10 = scmp.lt.u32.totalorder %s719_s6, %s715_s30  ;;  %p723_p12 = scmp.lt.u32.totalorder %s715_s30, %s907_s24 }
 0x104   : > { %p717_p7 = pnand %p716_p4, %p859_p5 }
 0x105   : > { %p722_p11 = por %p721_p10, %p720_p9 }
 0x106   : > { %p718_p8 = pneg %p717_p7 }
 0x107   : > { %p724_p13 = por %p723_p12, %p722_p11 }
 0x109   : > { %p725_p0 = pnand %p724_p13, %p718_p8 }
 0x10b   : > { %728 = shalt.err (!%p725_p0)
}
 0x10c   : > { %s798_s10 = smov 128   ;;  %s799_s17 = smov 8   ;;  %v456_v22 = vrot.slane %v455_v20, 4  ;;  %v464_v23 = vadd.f32 %v463_v19, %v462_v21 }
 0x10d   : > { %655 = dma.vmem_to_hbm [thread:$0]  (%p859_p5), %s902_s11, 256, %s907_s24, %s474_s25, %s798_s10, %s798_s10, %s799_s17  }
 0x10e   : > { %v457_v24 = vadd.f32 %v456_v22, %v455_v20  ;;  %v465_v25 = vrot.slane %v464_v23, 4  ;;  %s604_s19 = sshll.u32 %s898_s8, 1  ;;  %s622_s20 = sshll.u32 %s842_s16, 5 }
 0x10f   : > { %s174_s26 = scalar_lea.vmem [#allocation4], %s604_s19  ;;  %s938_s25 = scalar_lea.hbm %s985_s3, %s622_s20 }
 0x110   : > { %v458_v26 = vrot.slane %v457_v24, 2  ;;  %v466_v27 = vadd.f32 %v465_v25, %v464_v23  ;;  %s508_s27 = sshll.u32 %s174_s26, 4  ;;  %s479_s28 = scalar_lea.sflag [#allocation5], %s898_s8  ;;  %s940_s27 = int_to_ptr.vmem [resolvable:$true] %s508_s27 }
 0x111   : > { %s729_s29 = scalar_lea.vmem %s940_s27, 32  ;;  %s800_s16 = smov [#allocation4]  }
 0x112   : > { %v459_v28 = vadd.f32 %v458_v26, %v457_v24  ;;  %v467_v29 = vrot.slane %v466_v27, 2  ;;  %p730_p1 = scmp.ne.s32.totalorder %s940_s27, %s729_s29  ;;  %s733_s30 = sshll.u32 %s800_s16, 4  ;;  %s734_s30 = int_to_ptr.vmem [resolvable:$false] %s733_s30 }
 0x113   : > { %s735_s4 = scalar_lea.vmem %s734_s30, 64  ;;  %p736_p4 = scmp.lt.s32.totalorder %s940_s27, %s734_s30 }
 0x114   : > { %v460_v30 = vrot.slane %v459_v28, 1  ;;  %v468_v31 = vadd.f32 %v467_v29, %v466_v27  ;;  %p731_p2 = pnand %p730_p1, %p859_p5  ;;  %p737_p7 = scmp.lt.s32.totalorder %s735_s4, %s729_s29 }
 0x116   : > { %v469_v32 = vrot.slane %v468_v31, 1  ;;  %v461_v33 = vadd.f32 %v460_v30, %v459_v28  ;;  %p732_p3 = pneg %p731_p2  ;;  %p738_p8 = por %p737_p7, %p736_p4 }
 0x118   : > { %v470_v34 = vadd.f32 %v469_v32, %v468_v31  ;;  %p739_p9 = pnand %p738_p8, %p732_p3 }
 0x11a   : > { %v471_v35 = vsel %vm184_vm1, %v461_v33, %v470_v34 }
 0x11b   : > { %472 = vst [vmem:[%s174_s26] sm:$0x3] %v471_v35 }
 0x11c   : > { %742 = shalt.err (!%p739_p9)
}
 0x11d   : > { %s743_s8 = scalar_lea.hbm %s938_s25, 32  ;;  %s747_s7 = scalar_lea.hbm %s985_s3, 64 }
 0x11e   : > { %p744_p10 = scmp.ne.s32.totalorder %s938_s25, %s743_s8  ;;  %p748_p13 = scmp.lt.u32.totalorder %s938_s25, %s985_s3 }
 0x11f   : > { %p749_p0 = scmp.lt.u32.totalorder %s747_s7, %s743_s8  ;;  %p751_p2 = scmp.lt.u32.totalorder %s743_s8, %s938_s25 }
 0x120   : > { %p745_p11 = pnand %p744_p10, %p859_p5 }
 0x121   : > { %p750_p1 = por %p749_p0, %p748_p13 }
 0x122   : > { %p746_p12 = pneg %p745_p11 }
 0x123   : > { %p752_p3 = por %p751_p2, %p750_p1 }
 0x125   : > { %p753_p4 = pnand %p752_p3, %p746_p12 }
 0x127   : > { %756 = shalt.err (!%p753_p4)
}
 0x128   : > { %656 = dma.vmem_to_hbm [thread:$0]  (%p859_p5), %s940_s27, 32, %s938_s25, %s479_s28  }
 0x129 PF: > { %p666_p7 = scmp.ge.s32.totalorder %s795_s15, 2  ;;  %s520_s17 = sand.u32 1, %s783_s12  }
 0x12a   : > { %s521_s19 = scalar_lea.sflag [#allocation3], %s520_s17 }
 0x12b   : > { %p660_p8 = pnand %p666_p7, %p863_p6 }
 0x12d   : > { %774 = dma.done.wait (!%p660_p8), %s521_s19, 256  }
 0x12e   : > { %776 = vsyncadd (!%p660_p8), %s521_s19, 4294967040  ;;  %s530_s20 = scalar_lea.sflag [#allocation5], %s520_s17 }
 0x12f   : > { %778 = dma.done.wait (!%p660_p8), %s530_s20, 32  }
 0x130   : > { %780 = vsyncadd (!%p660_p8), %s530_s20, 4294967264  ;;  %p17_p5 = scmp.ge.s32.totalorder %s846_s18, 4   ;;  %s988_s12 = smov %s787_s13 }
 0x131   : > { %s989_s13 = smov %s791_s14  ;;  %s990_s14 = smov %s857_s21 }
 0x132   : > { %s991_s15 = smov %s846_s18  ;;  %19 = sbr.rel (!%p17_p5) target bundleno = 5 (0x5), region = 82 }
 0x139   :  { %535 = vsyncpa [#allocation3], 1 }
 0x13a   :  { %537 = vsyncpa [#allocation3 + $0x1], 1 }
 0x13b   :  { %538 = vsyncpa [#allocation5], 1 }
 0x13c   :  { %540 = vsyncpa [#allocation5 + $0x1], 1 }

</bundles_post_ra>
